<compile_context>
chip_gen: v6e
topology: v6e:2x2x1
jax: 0.10.0
libtpu: 0.0.40
codegen_flags: <defaults>
</compile_context>

<pallas_src>
import jax
import jax.numpy as jnp
import numpy as np
from jax.experimental import pallas as pl
from jax.experimental.pallas import tpu as pltpu


def bahdanau_kernel(q_ref, k_ref, wa_ref, ua_ref, b_ref, va_ref, vb_ref,
                    ctx_ref, w_ref):
    q = q_ref[...]                            # (TB, H)
    keys = k_ref[...]                         # (TB, S, H)
    TB, S, H = keys.shape

    # Projections on the MXU: one (TB,H)@(H,H) and one big (TB*S,H)@(H,H).
    q_proj = jnp.dot(q, wa_ref[...], preferred_element_type=jnp.float32)      # (TB, H)
    k_proj = jnp.dot(keys.reshape(TB * S, H), ua_ref[...],
                     preferred_element_type=jnp.float32).reshape(TB, S, H)    # (TB, S, H)

    # tanh(Wa(q) + Ua(k) + (b_Wa + b_Ua))  -- bias pre-combined in the wrapper.
    t = jnp.tanh(k_proj + q_proj[:, None, :] + b_ref[...])                    # (TB, S, H)

    # Va as a VPU multiply + lane reduce (avoids an N=1 MXU matmul).
    scores = jnp.sum(t * va_ref[...], axis=-1) + vb_ref[...]                  # (TB, S)

    # Numerically stable softmax over the sequence (lane) axis.
    m = jnp.max(scores, axis=-1, keepdims=True)
    e = jnp.exp(scores - m)
    w = e / jnp.sum(e, axis=-1, keepdims=True)                                # (TB, S)

    # context = bmm(weights, keys): batched (1, S) @ (S, H) on the MXU.
    ctx = jnp.einsum('bqs,bsh->bqh', w[:, None, :], keys,
                     preferred_element_type=jnp.float32).reshape(TB, H)       # (TB, H)

    ctx_ref[...] = ctx.astype(ctx_ref.dtype)
    w_ref[...] = w.astype(w_ref.dtype)                                        # lane-dense


def bahdanau_attention(query, keys, params):
    """query: (B, 1, H), keys: (B, S, H) -> (context (B,1,H), weights (B,1,S))."""
    B, _, H = query.shape
    S = keys.shape[1]
    wa_w, wa_b, ua_w, ua_b, va_w, va_b = params

    bias = (wa_b + ua_b).reshape(1, H)     # combined additive bias before tanh
    va_row = va_w.reshape(1, H)            # (H, 1) column -> (1, H) row
    vb = va_b.reshape(1, 1)

    # TB batch rows per grid step. For larger B, use TB=8 (sublane-aligned
    # block leading dim) and pad the batch; small batches go in one step.
    if B <= 8:
        TB, Bp = B, B
    else:
        TB = 8
        Bp = pl.cdiv(B, TB) * TB

    q2d = query.reshape(B, H)
    keys_p = keys
    if Bp != B:
        q2d = jnp.pad(q2d, ((0, Bp - B), (0, 0)))
        keys_p = jnp.pad(keys, ((0, Bp - B), (0, 0), (0, 0)))

    ctx2d, w2d = pl.pallas_call(
        bahdanau_kernel,
        out_shape=(jax.ShapeDtypeStruct((Bp, H), jnp.float32),
                   jax.ShapeDtypeStruct((Bp, S), jnp.float32)),
        grid_spec=pltpu.PrefetchScalarGridSpec(
            num_scalar_prefetch=0,
            grid=(Bp // TB,),
            in_specs=[
                pl.BlockSpec((TB, H), lambda b: (b, 0)),       # query (batched rows)
                pl.BlockSpec((TB, S, H), lambda b: (b, 0, 0)), # keys
                pl.BlockSpec((H, H), lambda b: (0, 0)),        # Wa weight (in, out)
                pl.BlockSpec((H, H), lambda b: (0, 0)),        # Ua weight (in, out)
                pl.BlockSpec((1, H), lambda b: (0, 0)),        # combined bias
                pl.BlockSpec((1, H), lambda b: (0, 0)),        # Va weight row
                pl.BlockSpec((1, 1), lambda b: (0, 0)),        # Va bias
            ],
            out_specs=[
                pl.BlockSpec((TB, H), lambda b: (b, 0)),       # context
                pl.BlockSpec((TB, S), lambda b: (b, 0)),       # weights (lane-dense)
            ],
        ),
        compiler_params=pltpu.CompilerParams(
            dimension_semantics=("parallel",)),                # shards over TCs on v7x
    )(q2d, keys_p, wa_w, ua_w, bias, va_row, vb)

    # Free reshapes only (no transpose): (B,H)->(B,1,H), (B,S)->(B,1,S).
    ctx = ctx2d[:B].reshape(B, 1, H)
    weights = w2d[:B].reshape(B, 1, S)
    return ctx, weights


def bahdanau_reference(query, keys, params):
    """Pure-JAX reference mirroring the PyTorch forward exactly."""
    wa_w, wa_b, ua_w, ua_b, va_w, va_b = params
    scores = jnp.tanh(query @ wa_w + wa_b + keys @ ua_w + ua_b) @ va_w + va_b  # (B, S, 1)
    scores = jnp.swapaxes(scores, 1, 2)                                        # (B, 1, S)
    weights = jax.nn.softmax(scores, axis=-1)
    context = jnp.matmul(weights, keys)                                        # (B, 1, H)
    return context, weights


def init_params(key, hidden_size):
    """Deterministic init; mimics torch.nn.Linear's U(-1/sqrt(fan_in), 1/sqrt(fan_in))."""
    H = hidden_size
    bound = 1.0 / np.sqrt(H)
    ks = jax.random.split(key, 6)
    wa_w = jax.random.uniform(ks[0], (H, H), jnp.float32, -bound, bound)   # (in, out)
    wa_b = jax.random.uniform(ks[1], (1, H), jnp.float32, -bound, bound)
    ua_w = jax.random.uniform(ks[2], (H, H), jnp.float32, -bound, bound)
    ua_b = jax.random.uniform(ks[3], (1, H), jnp.float32, -bound, bound)
    va_w = jax.random.uniform(ks[4], (H, 1), jnp.float32, -bound, bound)
    va_b = jax.random.uniform(ks[5], (1, 1), jnp.float32, -bound, bound)
    return (wa_w, wa_b, ua_w, ua_b, va_w, va_b)


if __name__ == "__main__":
    # Small shapes; H matches the module's hidden_size=128 (lane-dense hidden dim).
    B, S, H = 4, 16, 128

    key = jax.random.PRNGKey(0)
    k_param, k_q, k_k = jax.random.split(key, 3)
    params = init_params(k_param, H)
    query = jax.random.normal(k_q, (B, 1, H), jnp.float32)
    keys = jax.random.normal(k_k, (B, S, H), jnp.float32)

    ctx, weights = bahdanau_attention(query, keys, params)
    ctx, weights = jax.block_until_ready((ctx, weights))

    ctx_ref, w_ref = bahdanau_reference(query, keys, params)

    assert ctx.shape == (B, 1, H) and weights.shape == (B, 1, S)
    np.testing.assert_allclose(np.asarray(ctx), np.asarray(ctx_ref), atol=2e-5, rtol=2e-5)
    np.testing.assert_allclose(np.asarray(weights), np.asarray(w_ref), atol=2e-5, rtol=2e-5)

    print("KERNEL_OK")
</pallas_src>

<mosaic_0001>
module attributes {stable_mosaic.version = 11 : i64} {
  func.func @bahdanau_kernel(%arg0: i32, %arg1: memref<4x128xf32, #tpu.memory_space<vmem>>, %arg2: memref<4x16x128xf32, #tpu.memory_space<vmem>>, %arg3: memref<128x128xf32, #tpu.memory_space<vmem>>, %arg4: memref<128x128xf32, #tpu.memory_space<vmem>>, %arg5: memref<1x128xf32, #tpu.memory_space<vmem>>, %arg6: memref<1x128xf32, #tpu.memory_space<vmem>>, %arg7: memref<1x1xf32, #tpu.memory_space<vmem>>, %arg8: memref<4x128xf32, #tpu.memory_space<vmem>>, %arg9: memref<4x16xf32, #tpu.memory_space<vmem>>) attributes {dimension_semantics = [#tpu.dimension_semantics<parallel>], iteration_bounds = array<i64: 1>, scalar_prefetch = 0 : i64, scratch_operands = 0 : i64, tpu.core_type = #tpu.core_type<tc>, window_params = [{transform_indices = @transform_0, window_bounds = array<i64: 4, 128>}, {transform_indices = @transform_1, window_bounds = array<i64: 4, 16, 128>}, {pipeline_mode = #tpu.pipeline_mode<synchronous>, transform_indices = @transform_2, window_bounds = array<i64: 128, 128>}, {pipeline_mode = #tpu.pipeline_mode<synchronous>, transform_indices = @transform_3, window_bounds = array<i64: 128, 128>}, {pipeline_mode = #tpu.pipeline_mode<synchronous>, transform_indices = @transform_4, window_bounds = array<i64: 1, 128>}, {pipeline_mode = #tpu.pipeline_mode<synchronous>, transform_indices = @transform_5, window_bounds = array<i64: 1, 128>}, {pipeline_mode = #tpu.pipeline_mode<synchronous>, transform_indices = @transform_6, window_bounds = array<i64: 1, 1>}, {transform_indices = @transform_7, window_bounds = array<i64: 4, 128>}, {transform_indices = @transform_8, window_bounds = array<i64: 4, 16>}]} {
    %c0 = arith.constant 0 : index
    %c0_0 = arith.constant 0 : index
    %0 = vector.load %arg1[%c0, %c0_0] : memref<4x128xf32, #tpu.memory_space<vmem>>, vector<4x128xf32>
    %c0_1 = arith.constant 0 : index
    %c0_2 = arith.constant 0 : index
    %c0_3 = arith.constant 0 : index
    %1 = vector.load %arg2[%c0_1, %c0_2, %c0_3] : memref<4x16x128xf32, #tpu.memory_space<vmem>>, vector<4x16x128xf32>
    %c0_4 = arith.constant 0 : index
    %c0_5 = arith.constant 0 : index
    %2 = vector.load %arg3[%c0_4, %c0_5] : memref<128x128xf32, #tpu.memory_space<vmem>>, vector<128x128xf32>
    %cst = arith.constant dense<0.000000e+00> : vector<4x128xf32>
    %3 = tpu.matmul %0, %2, %cst {dimension_numbers = #tpu.dot_dimension_numbers<[1], [0], [0], [1], [0, 0, 1, 1], [], []>} : vector<4x128xf32>, vector<128x128xf32>, vector<4x128xf32> -> vector<4x128xf32>
    %4 = vector.shape_cast %1 : vector<4x16x128xf32> to vector<64x128xf32>
    %c0_6 = arith.constant 0 : index
    %c0_7 = arith.constant 0 : index
    %5 = vector.load %arg4[%c0_6, %c0_7] : memref<128x128xf32, #tpu.memory_space<vmem>>, vector<128x128xf32>
    %cst_8 = arith.constant dense<0.000000e+00> : vector<64x128xf32>
    %6 = tpu.matmul %4, %5, %cst_8 {dimension_numbers = #tpu.dot_dimension_numbers<[1], [0], [0], [1], [0, 0, 1, 1], [], []>} : vector<64x128xf32>, vector<128x128xf32>, vector<64x128xf32> -> vector<64x128xf32>
    %7 = vector.shape_cast %6 : vector<64x128xf32> to vector<4x16x128xf32>
    %8 = vector.shape_cast %3 : vector<4x128xf32> to vector<4x1x128xf32>
    %9 = vector.broadcast %8 : vector<4x1x128xf32> to vector<4x16x128xf32>
    %10 = arith.addf %7, %9 : vector<4x16x128xf32>
    %c0_9 = arith.constant 0 : index
    %c0_10 = arith.constant 0 : index
    %11 = vector.load %arg5[%c0_9, %c0_10] : memref<1x128xf32, #tpu.memory_space<vmem>>, vector<1x128xf32>
    %12 = vector.shape_cast %11 : vector<1x128xf32> to vector<1x1x128xf32>
    %13 = vector.broadcast %12 : vector<1x1x128xf32> to vector<4x16x128xf32>
    %14 = arith.addf %10, %13 : vector<4x16x128xf32>
    %15 = math.tanh %14 : vector<4x16x128xf32>
    %c0_11 = arith.constant 0 : index
    %c0_12 = arith.constant 0 : index
    %16 = vector.load %arg6[%c0_11, %c0_12] : memref<1x128xf32, #tpu.memory_space<vmem>>, vector<1x128xf32>
    %17 = vector.shape_cast %16 : vector<1x128xf32> to vector<1x1x128xf32>
    %18 = vector.broadcast %17 : vector<1x1x128xf32> to vector<4x16x128xf32>
    %19 = arith.mulf %15, %18 : vector<4x16x128xf32>
    %cst_13 = arith.constant dense<0.000000e+00> : vector<4x16xf32>
    %20 = vector.multi_reduction <add>, %19, %cst_13 [2] : vector<4x16x128xf32> to vector<4x16xf32>
    %c0_14 = arith.constant 0 : index
    %c0_15 = arith.constant 0 : index
    %21 = vector.load %arg7[%c0_14, %c0_15] : memref<1x1xf32, #tpu.memory_space<vmem>>, vector<1x1xf32>
    %22 = vector.broadcast %21 : vector<1x1xf32> to vector<4x16xf32>
    %23 = arith.addf %20, %22 : vector<4x16xf32>
    %cst_16 = arith.constant dense<0xFF800000> : vector<4xf32>
    %24 = vector.multi_reduction <maximumf>, %23, %cst_16 [1] : vector<4x16xf32> to vector<4xf32>
    %25 = vector.shape_cast %24 : vector<4xf32> to vector<4x1xf32>
    %26 = vector.broadcast %25 : vector<4x1xf32> to vector<4x16xf32>
    %27 = arith.subf %23, %26 : vector<4x16xf32>
    %28 = math.exp %27 : vector<4x16xf32>
    %cst_17 = arith.constant dense<0.000000e+00> : vector<4xf32>
    %29 = vector.multi_reduction <add>, %28, %cst_17 [1] : vector<4x16xf32> to vector<4xf32>
    %30 = vector.shape_cast %29 : vector<4xf32> to vector<4x1xf32>
    %31 = vector.broadcast %30 : vector<4x1xf32> to vector<4x16xf32>
    %32 = arith.divf %28, %31 : vector<4x16xf32>
    %33 = vector.shape_cast %32 : vector<4x16xf32> to vector<4x1x16xf32>
    "tpu.trace_start"() <{level = 10 : i32, message = "bqs,bsh->bqh"}> : () -> ()
    %cst_18 = arith.constant dense<0.000000e+00> : vector<4x1x128xf32>
    %34 = tpu.matmul %33, %1, %cst_18 {dimension_numbers = #tpu.dot_dimension_numbers<[2], [1], [1], [2], [0, 0, 0, 1, 1, 2], [0], [0]>} : vector<4x1x16xf32>, vector<4x16x128xf32>, vector<4x1x128xf32> -> vector<4x1x128xf32>
    "tpu.trace_stop"() : () -> ()
    %35 = vector.shape_cast %34 : vector<4x1x128xf32> to vector<4x128xf32>
    %c0_19 = arith.constant 0 : index
    %c0_20 = arith.constant 0 : index
    %36 = vector.load %arg8[%c0_19, %c0_20] : memref<4x128xf32, #tpu.memory_space<vmem>>, vector<4x128xf32>
    tpu.vector_store %arg8[%c0_19, %c0_20], %35 {strides = array<i32>} : memref<4x128xf32, #tpu.memory_space<vmem>>, vector<4x128xf32>,
    %c0_21 = arith.constant 0 : index
    %c0_22 = arith.constant 0 : index
    %37 = vector.load %arg9[%c0_21, %c0_22] : memref<4x16xf32, #tpu.memory_space<vmem>>, vector<4x16xf32>
    tpu.vector_store %arg9[%c0_21, %c0_22], %32 {strides = array<i32>} : memref<4x16xf32, #tpu.memory_space<vmem>>, vector<4x16xf32>,
    return
  }
  func.func @transform_0(%arg0: i32) -> (i32, i32) {
    %c0_i32 = arith.constant 0 : i32
    %c0_i32_0 = arith.constant 0 : i32
    return %arg0, %c0_i32 : i32, i32
  }
  func.func @transform_1(%arg0: i32) -> (i32, i32, i32) {
    %c0_i32 = arith.constant 0 : i32
    %c0_i32_0 = arith.constant 0 : i32
    %c0_i32_1 = arith.constant 0 : i32
    return %arg0, %c0_i32, %c0_i32_0 : i32, i32, i32
  }
  func.func @transform_2(%arg0: i32) -> (i32, i32) {
    %c0_i32 = arith.constant 0 : i32
    %c0_i32_0 = arith.constant 0 : i32
    %c0_i32_1 = arith.constant 0 : i32
    return %c0_i32, %c0_i32_0 : i32, i32
  }
  func.func @transform_3(%arg0: i32) -> (i32, i32) {
    %c0_i32 = arith.constant 0 : i32
    %c0_i32_0 = arith.constant 0 : i32
    %c0_i32_1 = arith.constant 0 : i32
    return %c0_i32, %c0_i32_0 : i32, i32
  }
  func.func @transform_4(%arg0: i32) -> (i32, i32) {
    %c0_i32 = arith.constant 0 : i32
    %c0_i32_0 = arith.constant 0 : i32
    %c0_i32_1 = arith.constant 0 : i32
    return %c0_i32, %c0_i32_0 : i32, i32
  }
  func.func @transform_5(%arg0: i32) -> (i32, i32) {
    %c0_i32 = arith.constant 0 : i32
    %c0_i32_0 = arith.constant 0 : i32
    %c0_i32_1 = arith.constant 0 : i32
    return %c0_i32, %c0_i32_0 : i32, i32
  }
  func.func @transform_6(%arg0: i32) -> (i32, i32) {
    %c0_i32 = arith.constant 0 : i32
    %c0_i32_0 = arith.constant 0 : i32
    %c0_i32_1 = arith.constant 0 : i32
    return %c0_i32, %c0_i32_0 : i32, i32
  }
  func.func @transform_7(%arg0: i32) -> (i32, i32) {
    %c0_i32 = arith.constant 0 : i32
    %c0_i32_0 = arith.constant 0 : i32
    return %arg0, %c0_i32 : i32, i32
  }
  func.func @transform_8(%arg0: i32) -> (i32, i32) {
    %c0_i32 = arith.constant 0 : i32
    %c0_i32_0 = arith.constant 0 : i32
    return %arg0, %c0_i32 : i32, i32
  }
}

</mosaic_0001>

<bundles_post_ra>
// kernel: tpu_custom_call.1
= control target key start
LH: loop header
LB: loop body
LE: loop exit
PB: predicated region body
PF: predicated region fallthrough
CT: control target
= control target key end

     0   :  { %s1639_s0 = inlined_call_operand.hbm [shape: f32[4,128], index: 0, kind: input, shape index: {}]   ;;  %s1640_s1 = inlined_call_operand.hbm [shape: f32[4,16,128], index: 1, kind: input, shape index: {}]   ;;  %s1641_s2 = inlined_call_operand.hbm [shape: f32[128,128], index: 2, kind: input, shape index: {}]   ;;  %s1642_s3 = inlined_call_operand.hbm [shape: f32[128,128], index: 3, kind: input, shape index: {}]   ;;  %s1643_s4 = inlined_call_operand.vmem [shape: f32[1,128], index: 4, kind: input, shape index: {}]   ;;  %s1644_s5 = inlined_call_operand.vmem [shape: f32[1,128], index: 5, kind: input, shape index: {}]   ;;  %s1645_s6 = inlined_call_operand.<no memory space> [shape: f32[1,1], index: 6, kind: input, shape index: {}]   ;;  %s1646_s7 = inlined_call_operand.hbm [shape: f32[4,128], index: 7, kind: output, shape index: {0}]   ;;  %s1647_s8 = inlined_call_operand.hbm [shape: f32[4,16], index: 8, kind: output, shape index: {1}]  }
   0x1   :  { %v14_v0 = vstv %s1645_s6 }
   0x2   :  { %15 = vst [vmem:[#allocation2] sm:$0x1] %v14_v0 }
   0x3   :  { %16 = vsyncpa [#allocation4], 0 }
   0x4   :  { %17 = vsyncpa [#allocation7], 0 }
   0x5   :  { %18 = vsyncpa [#allocation10], 0 }
   0x6   :  { %19 = vsyncpa [#allocation5], 0 }
   0x7   :  { %20 = vsyncpa [#allocation13], 0  ;;  %s1394_s29 = smov [#allocation6]  }
   0x8   :  { %s36_s30 = sshll.u32 %s1394_s29, 4  ;;  %s37_s30 = int_to_ptr.vmem [resolvable:$true] %s36_s30 }
   0x9   :  { %s1272_s9 = scalar_lea.vmem %s37_s30, 1024  ;;  %p1277_p1 = scmp.lt.s32.totalorder %s37_s30, %s37_s30 }
   0xa   :  { %p1273_p0 = scmp.ne.s32.totalorder %s37_s30, %s1272_s9  ;;  %p1278_p2 = scmp.lt.s32.totalorder %s1272_s9, %s1272_s9 }
   0xc   :  { %p1279_p3 = por %p1278_p2, %p1277_p1 }
   0xe   :  { %p1280_p4 = pnand %p1279_p3, %p1273_p0 }
  0x10   :  { %1283 = shalt.err (!%p1280_p4)
}
  0x11   :  { %s1395_s10 = smov 128   ;;  %s1396_s11 = smov 8  }
  0x12   :  { %42 = dma.hbm_to_vmem [thread:$0]  %s1640_s1, 1024, %s37_s30, [#allocation7], %s1395_s10, %s1395_s10, %s1396_s11  }
  0x13   :  { %s1397_s13 = smov [#allocation3]   ;;  %s1398_s15 = smov [#allocation8]  }
  0x14   :  { %s27_s14 = sshll.u32 %s1397_s13, 4  ;;  %s48_s16 = sshll.u32 %s1398_s15, 4  ;;  %s28_s14 = int_to_ptr.vmem [resolvable:$true] %s27_s14  ;;  %s49_s16 = int_to_ptr.vmem [resolvable:$true] %s48_s16 }
  0x15   :  { %s1292_s17 = scalar_lea.vmem %s28_s14, 64  ;;  %p1297_p6 = scmp.lt.s32.totalorder %s28_s14, %s28_s14 }
  0x16   :  { %p1293_p5 = scmp.ne.s32.totalorder %s28_s14, %s1292_s17  ;;  %p1298_p7 = scmp.lt.s32.totalorder %s1292_s17, %s1292_s17 }
  0x18   :  { %p1299_p8 = por %p1298_p7, %p1297_p6 }
  0x1a   :  { %p1300_p9 = pnand %p1299_p8, %p1293_p5 }
  0x1c   :  { %1303 = shalt.err (!%p1300_p9)
}
  0x1d   :  { %30 = dma.hbm_to_vmem [thread:$0]  %s1639_s0, 64, %s28_s14, [#allocation4]  }
  0x1e   :  { %s1312_s20 = scalar_lea.vmem %s49_s16, 2048  ;;  %p1317_p11 = scmp.lt.s32.totalorder %s49_s16, %s49_s16 }
  0x1f   :  { %p1313_p10 = scmp.ne.s32.totalorder %s49_s16, %s1312_s20  ;;  %p1318_p12 = scmp.lt.s32.totalorder %s1312_s20, %s1312_s20 }
  0x21   :  { %p1319_p13 = por %p1318_p12, %p1317_p11 }
  0x23   :  { %p1320_p0 = pnand %p1319_p13, %p1313_p10 }
  0x25   :  { %1323 = shalt.err (!%p1320_p0)
}
  0x26   :  { %54 = dma.hbm_to_vmem [thread:$0]  %s1641_s2, 2048, %s49_s16, [#allocation7], %s1395_s10, %s1395_s10, %s1396_s11  }
  0x27   :  { %s1399_s22 = smov [#allocation9]  }
  0x28   :  { %s60_s23 = sshll.u32 %s1399_s22, 4  ;;  %s61_s23 = int_to_ptr.vmem [resolvable:$true] %s60_s23 }
  0x29   :  { %s1332_s24 = scalar_lea.vmem %s61_s23, 2048  ;;  %p1337_p2 = scmp.lt.s32.totalorder %s61_s23, %s61_s23 }
  0x2a   :  { %p1333_p1 = scmp.ne.s32.totalorder %s61_s23, %s1332_s24  ;;  %p1338_p3 = scmp.lt.s32.totalorder %s1332_s24, %s1332_s24 }
  0x2c   :  { %p1339_p4 = por %p1338_p3, %p1337_p2 }
  0x2e   :  { %p1340_p5 = pnand %p1339_p4, %p1333_p1 }
  0x30   :  { %1343 = shalt.err (!%p1340_p5)
}
  0x31   :  { %66 = dma.hbm_to_vmem [thread:$0]  %s1642_s3, 2048, %s61_s23, [#allocation10], %s1395_s10, %s1395_s10, %s1396_s11  }
  0x32   :  { %1384 = dma.done.wait [#allocation4], 64  }
  0x33   :  { %1385 = vsyncadd [#allocation4], 4294967232 }
  0x34   :  { %1386 = dma.done.wait [#allocation7], 3072  }
  0x35   :  { %1387 = vsyncadd [#allocation7], 4294964224 }
  0x36   :  { %1388 = dma.done.wait [#allocation10], 2048  }
  0x37   :  { %1389 = vsyncadd [#allocation10], 4294965248  ;;  %v1400_v1 = vmov 0.0   ;;  %vm1401_vm0 = vmmov 0   ;;  %v109_v2 = vld [vmem:[#allocation8 + $0x78] sm:$0xff]  ;;  %v108_v4 = vld [vmem:[#allocation8 + $0x70] sm:$0xff]  ;;  %v305_v46 = vlaneseq }
  0x38   :  { %1103 = vmatprep.subr.mxu0 %v1400_v1  ;;  %1135 = vmatprep.mubr.msk.f32.mxu0 %vm1401_vm0, %v1400_v1  ;;  %v195_v3 = vld [vmem:[#allocation9 + $0x78] sm:$0xff]  ;;  %v194_v5 = vld [vmem:[#allocation9 + $0x70] sm:$0xff]  ;;  %v107_v6 = vld [vmem:[#allocation8 + $0x68] sm:$0xff]  ;;  %v1402_v43 = vmov 0   ;;  %v1403_v44 = vmov 1966171168  }
  0x39   :  { %1104 = vmatpush3.msra.mxu0 %v109_v2  ;;  %1138 = vmatprep.subr.mxu1 %v195_v3  ;;  %v193_v7 = vld [vmem:[#allocation9 + $0x68] sm:$0xff]  ;;  %v106_v8 = vld [vmem:[#allocation8 + $0x60] sm:$0xff]  ;;  %v105_v10 = vld [vmem:[#allocation8 + $0x58] sm:$0xff]  ;;  %v303_v45 = vunpack.c.l.s4 %v1403_v44  ;;  %v1517_v48 = vshrl.u32 %v305_v46, 7  ;;  %vm445_vm1 = vcmask 130112   ;;  %vm474_vm2 = vcmask 1041409  }
  0x3a   :  { %1105 = vmatprep.subr.mxu0 %v1400_v1  ;;  %1139 = vmatpush3.msra.mxu1 %v195_v3  ;;  %v192_v9 = vld [vmem:[#allocation9 + $0x60] sm:$0xff]  ;;  %v191_v11 = vld [vmem:[#allocation9 + $0x58] sm:$0xff]  ;;  %v104_v12 = vld [vmem:[#allocation8 + $0x50] sm:$0xff]  ;;  %vm476_vm3 = vcmask 1042434   ;;  %vm478_vm4 = vcmask 1043459   ;;  %vm481_vm5 = vcmask 125952  }
  0x3b   :  { %1106 = vmatpush3.msra.mxu0 %v108_v4  ;;  %1140 = vmatprep.subr.mxu1 %v194_v5  ;;  %v190_v13 = vld [vmem:[#allocation9 + $0x50] sm:$0xff]  ;;  %v103_v14 = vld [vmem:[#allocation8 + $0x48] sm:$0xff]  ;;  %v102_v16 = vld [vmem:[#allocation8 + $0x40] sm:$0xff]  ;;  %v304_v47 = vunpack.c.0.s8 %v303_v45  ;;  %v1521_v52 = vsub.s32 0, %v1517_v48  ;;  %vm655_vm6 = vcmask 130048  }
  0x3c   :  { %1107 = vmatprep.subr.mxu0 %v1400_v1  ;;  %1141 = vmatpush3.msra.mxu1 %v194_v5  ;;  %v189_v15 = vld [vmem:[#allocation9 + $0x48] sm:$0xff]  ;;  %v188_v17 = vld [vmem:[#allocation9 + $0x40] sm:$0xff]  ;;  %v101_v18 = vld [vmem:[#allocation8 + $0x38] sm:$0xff] }
  0x3d   :  { %1108 = vmatpush3.msra.mxu0 %v107_v6  ;;  %1142 = vmatprep.subr.mxu1 %v193_v7  ;;  %v187_v19 = vld [vmem:[#allocation9 + $0x38] sm:$0xff]  ;;  %v100_v20 = vld [vmem:[#allocation8 + $0x30] sm:$0xff]  ;;  %v99_v22 = vld [vmem:[#allocation8 + $0x28] sm:$0xff]  ;;  %v307_v49 = vsub.s32 %v304_v47, %v1517_v48 }
  0x3e   :  { %1109 = vmatprep.subr.mxu0 %v1400_v1  ;;  %1143 = vmatpush3.msra.mxu1 %v193_v7  ;;  %v186_v21 = vld [vmem:[#allocation9 + $0x30] sm:$0xff]  ;;  %v185_v23 = vld [vmem:[#allocation9 + $0x28] sm:$0xff]  ;;  %v98_v24 = vld [vmem:[#allocation8 + $0x20] sm:$0xff] }
  0x3f   :  { %1110 = vmatpush3.msra.mxu0 %v106_v8  ;;  %1144 = vmatprep.subr.mxu1 %v192_v9  ;;  %v184_v25 = vld [vmem:[#allocation9 + $0x20] sm:$0xff]  ;;  %v97_v26 = vld [vmem:[#allocation8 + $0x18] sm:$0xff]  ;;  %v96_v28 = vld [vmem:[#allocation8 + $0x10] sm:$0xff] }
  0x40   :  { %1111 = vmatprep.subr.mxu0 %v1400_v1  ;;  %1145 = vmatpush3.msra.mxu1 %v192_v9  ;;  %v183_v27 = vld [vmem:[#allocation9 + $0x18] sm:$0xff]  ;;  %v182_v29 = vld [vmem:[#allocation9 + $0x10] sm:$0xff]  ;;  %v95_v30 = vld [vmem:[#allocation8 + $0x8] sm:$0xff] }
  0x41   :  { %1112 = vmatpush3.msra.mxu0 %v105_v10  ;;  %1146 = vmatprep.subr.mxu1 %v191_v11  ;;  %v181_v31 = vld [vmem:[#allocation9 + $0x8] sm:$0xff]  ;;  %v94_v32 = vld [vmem:[#allocation8] sm:$0xff]  ;;  %v85_v34 = vld [vmem:[#allocation3] sm:$0xf] }
  0x42   :  { %1113 = vmatprep.subr.mxu0 %v1400_v1  ;;  %1147 = vmatpush3.msra.mxu1 %v191_v11  ;;  %v180_v33 = vld [vmem:[#allocation9] sm:$0xff]  ;;  %v87_v36 = vld [vmem:[#allocation6 + $0x8] sm:$0xff]  ;;  %v1493_v37 = vld [vmem:[#allocation6 + $0x10] sm:$0xff] }
  0x43   :  { %1114 = vmatpush3.msra.mxu0 %v104_v12  ;;  %1148 = vmatprep.subr.mxu1 %v190_v13  ;;  %v86_v35 = vld [vmem:[#allocation6] sm:$0xff]  ;;  %v1497_v38 = vld [vmem:[#allocation6 + $0x18] sm:$0xff]  ;;  %v1507_v40 = vld [vmem:[#allocation6 + $0x28] sm:$0xff] }
  0x44   :  { %1115 = vmatprep.subr.mxu0 %v1400_v1  ;;  %1149 = vmatpush3.msra.mxu1 %v190_v13  ;;  %v1500_v39 = vld [vmem:[#allocation6 + $0x20] sm:$0xff]  ;;  %v1509_v41 = vld [vmem:[#allocation6 + $0x30] sm:$0xff]  ;;  %v1513_v42 = vld [vmem:[#allocation6 + $0x38] sm:$0xff] }
  0x45   :  { %1116 = vmatpush3.msra.mxu0 %v103_v14  ;;  %1150 = vmatprep.subr.mxu1 %v189_v15  ;;  %v1043_v61 = vld [vmem:[%s1643_s4] ss:$0 sm:$0xff] }
  0x46   :  { %1117 = vmatprep.subr.mxu0 %v1400_v1  ;;  %1151 = vmatpush3.msra.mxu1 %v189_v15 }
  0x47   :  { %1118 = vmatpush3.msra.mxu0 %v102_v16  ;;  %1152 = vmatprep.subr.mxu1 %v188_v17 }
  0x48   :  { %1119 = vmatprep.subr.mxu0 %v1400_v1  ;;  %1153 = vmatpush3.msra.mxu1 %v188_v17 }
  0x49   :  { %1120 = vmatpush3.msra.mxu0 %v101_v18  ;;  %1154 = vmatprep.subr.mxu1 %v187_v19 }
  0x4a   :  { %1121 = vmatprep.subr.mxu0 %v1400_v1  ;;  %1155 = vmatpush3.msra.mxu1 %v187_v19 }
  0x4b   :  { %1122 = vmatpush3.msra.mxu0 %v100_v20  ;;  %1156 = vmatprep.subr.mxu1 %v186_v21 }
  0x4c   :  { %1123 = vmatprep.subr.mxu0 %v1400_v1  ;;  %1157 = vmatpush3.msra.mxu1 %v186_v21 }
  0x4d   :  { %1124 = vmatpush3.msra.mxu0 %v99_v22  ;;  %1158 = vmatprep.subr.mxu1 %v185_v23 }
  0x4e   :  { %1125 = vmatprep.subr.mxu0 %v1400_v1  ;;  %1159 = vmatpush3.msra.mxu1 %v185_v23 }
  0x4f   :  { %1126 = vmatpush3.msra.mxu0 %v98_v24  ;;  %1160 = vmatprep.subr.mxu1 %v184_v25 }
  0x50   :  { %1127 = vmatprep.subr.mxu0 %v1400_v1  ;;  %1161 = vmatpush3.msra.mxu1 %v184_v25  ;;  %v1044_v25 = vld [vmem:[%s1644_s5] ss:$0 sm:$0xff]  ;;  %s1404_s5 = smov [#allocation12]  }
  0x51   :  { %1128 = vmatpush3.msra.mxu0 %v97_v26  ;;  %1162 = vmatprep.subr.mxu1 %v183_v27  ;;  %s1028_s27 = sshll.u32 %s1404_s5, 4  ;;  %s1029_s27 = int_to_ptr.vmem [resolvable:$true] %s1028_s27 }
  0x52   :  { %1129 = vmatprep.subr.mxu0 %v1400_v1  ;;  %1163 = vmatpush3.msra.mxu1 %v183_v27  ;;  %s1344_s28 = scalar_lea.vmem %s1029_s27, 64  ;;  %p1349_p7 = scmp.lt.s32.totalorder %s1029_s27, %s1029_s27 }
  0x53   :  { %1130 = vmatpush3.msra.mxu0 %v96_v28  ;;  %1164 = vmatprep.subr.mxu1 %v182_v29  ;;  %p1345_p6 = scmp.ne.s32.totalorder %s1029_s27, %s1344_s28  ;;  %p1350_p8 = scmp.lt.s32.totalorder %s1344_s28, %s1344_s28 }
  0x54   :  { %1131 = vmatprep.subr.mxu0 %v1400_v1  ;;  %1165 = vmatpush3.msra.mxu1 %v182_v29 }
  0x55   :  { %1132 = vmatpush3.msra.mxu0 %v95_v30  ;;  %1166 = vmatprep.subr.mxu1 %v181_v31  ;;  %p1351_p9 = por %p1350_p8, %p1349_p7 }
  0x56   :  { %1133 = vmatprep.subr.mxu0 %v1400_v1  ;;  %1167 = vmatpush3.msra.mxu1 %v181_v31 }
  0x57   :  { %1134 = vmatpush3.msra.mxu0 %v94_v32  ;;  %1168 = vmatprep.subr.mxu1 %v180_v33  ;;  %p1352_p10 = pnand %p1351_p9, %p1345_p6 }
  0x58   :  { %1136 = vmatmul.mubr.f32.vlgmr.msra.gmra.mxu0 %v85_v34  ;;  %1169 = vmatpush3.msra.mxu1 %v180_v33 }
  0x59   :  { %1170 = vmatprep.mubr.f32.mxu1 %v86_v35  ;;  %1182 = vmatprep.subr.mxu0 %v1400_v1 }
  0x5a   :  { %1171 = vmatmul.mubr.f32.vlgmr.msra.gmra.mxu1 %v87_v36  ;;  %1183 = vmatpush3.msra.mxu0 %v87_v36 }
  0x5b   :  { %1173 = vmatprep.mubr.f32.mxu1 %v1493_v37  ;;  %1184 = vmatprep.subr.mxu0 %v1400_v1 }
  0x5c   :  { %1185 = vmatpush3.msra.mxu0 %v86_v35  ;;  %1186 = vmatprep.mubr.msk.f32.mxu0 %vm1401_vm0, %v1400_v1 }
  0x5d   :  { %1189 = vmatprep.subr.mxu0 %v1400_v1  ;;  %1222 = vset.pattern.permute.xlu0 %v1402_v43 }
  0x5e   :  { %1174 = vmatmul.mubr.f32.gmra.mxu1 %v1497_v38  ;;  %1223 = vset.pattern.permute.xlu1 %v1402_v43 }
  0x5f   :  { %1176 = vmatprep.mubr.f32.mxu1 %v1500_v39 }
  0x62   :  { %1177 = vmatmul.mubr.f32.gmra.mxu1 %v1507_v40 }
  0x63   :  { %1179 = vmatprep.mubr.f32.mxu1 %v1509_v41 }
  0x66   :  { %1180 = vmatmul.mubr.f32.gmra.mxu1 %v1513_v42 }
 0x118   :  { %v176_v50 = vpop.f32.mrf.mxu0 }
 0x119   :  { %v308_v51 = vrot.slane %v176_v50, %v307_v49  ;;  %v1045_v50 = vld [vmem:[#allocation2] ss:$0 sm:$0xff] }
 0x11a   :  { %v1172_v53 = vpop.f32.mrf.mxu1  ;;  %v1137_v54 = vpop.f32.mrf.mxu0 }
 0x11b   :  { %v309_v55 = vcombine.high %v308_v51, %v308_v51  ;;  %v316_v56 = vrot.slane %v308_v51, %v307_v49 }
 0x11c   :  { %v262_v57 = vpop.f32.mrf.mxu1 }
 0x11d   :  { %v329_v58 = vrot.slane %v316_v56, %v1521_v52  ;;  %v323_v59 = vrot.slane %v309_v55, %v307_v49  ;;  %v324_v60 = vcombine.high %v316_v56, %v316_v56 }
 0x11e   :  { %v1175_v62 = vpop.f32.mrf.mxu1 }
 0x11f   :  { %v347_v63 = vadd.f32 %v1172_v53, %v329_v58  ;;  %v346_v0 = vadd.f32 %v329_v58, %v262_v57  ;;  %v333_v2 = vrot.slane %v323_v59, %v1521_v52  ;;  %v337_v4 = vrot.slane %v324_v60, %v1521_v52 }
 0x120   :  { %v272_v3 = vpop.f32.mrf.mxu1  ;;  %v325_v10 = vcombine.high %v323_v59, %v323_v59  ;;  %v435_v57 = vand.u32 127, %v305_v46 }
 0x121   :  { %v362_v5 = vadd.f32 %v1043_v61, %v347_v63  ;;  %v361_v6 = vadd.f32 %v1043_v61, %v346_v0  ;;  %v349_v7 = vadd.f32 %v1175_v62, %v333_v2  ;;  %v348_v8 = vadd.f32 %v333_v2, %v272_v3 }
 0x122   :  { %v1178_v9 = vpop.f32.mrf.mxu1  ;;  %v341_v17 = vrot.slane %v325_v10, %v1521_v52  ;;  %v440_v58 = vadd.s32 4294967288, %v435_v57 }
 0x123   :  { %v363_v11 = vadd.f32 %v1043_v61, %v348_v8  ;;  %1224 = vtanh.f32 %v361_v6  ;;  %v364_v12 = vadd.f32 %v1043_v61, %v349_v7  ;;  %v351_v13 = vadd.f32 %v1178_v9, %v337_v4 }
 0x124   :  { %v282_v14 = vpop.f32.mrf.mxu1  ;;  %1226 = vtanh.f32 %v362_v5  ;;  %v1538_v62 = vsub.s32 %v440_v58, %v1517_v48 }
 0x125   :  { %v350_v15 = vadd.f32 %v337_v4, %v282_v14  ;;  %1228 = vtanh.f32 %v363_v11  ;;  %v366_v19 = vadd.f32 %v1043_v61, %v351_v13 }
 0x126   :  { %v1181_v16 = vpop.f32.mrf.mxu1  ;;  %1230 = vtanh.f32 %v364_v12 }
 0x127   :  { %v365_v18 = vadd.f32 %v1043_v61, %v350_v15  ;;  %v353_v20 = vadd.f32 %v1181_v16, %v341_v17 }
 0x128   :  { %v292_v21 = vpop.f32.mrf.mxu1 }
 0x129   :  { %v352_v22 = vadd.f32 %v341_v17, %v292_v21  ;;  %1232 = vtanh.f32 %v365_v18  ;;  %v368_v24 = vadd.f32 %v1043_v61, %v353_v20 }
 0x12a   :  { %1234 = vtanh.f32 %v366_v19 }
 0x12b   :  { %v367_v23 = vadd.f32 %v1043_v61, %v352_v22  ;;  %v1535_v61 = vsub.s32 %v435_v57, %v1517_v48 }
 0x12d   :  { %1236 = vtanh.f32 %v367_v23 }
 0x12e   :  { %1238 = vtanh.f32 %v368_v24 }
 0x130   :  { %v1225_v26 = vpop.eup %1224 }
 0x131   :  { %v1227_v27 = vpop.eup %1226  ;;  %v384_v28 = vmul.f32 %v1225_v26, %v1044_v25  ;;  %v492_v26 = vsub.s32 1, %v1517_v48 }
 0x132   :  { %v1229_v29 = vpop.eup %1228  ;;  %v385_v32 = vmul.f32 %v1227_v27, %v1044_v25 }
 0x133   :  { %392 = vadd.xlane.f32.xlu0 %v384_v28  ;;  %v386_v30 = vmul.f32 %v1229_v29, %v1044_v25  ;;  %v1231_v31 = vpop.eup %1230 }
 0x134   :  { %v387_v34 = vmul.f32 %v1231_v31, %v1044_v25 }
 0x135   :  { %396 = vadd.xlane.f32.xlu1 %v386_v30 }
 0x136   :  { %v1233_v33 = vpop.eup %1232 }
 0x137   :  { %394 = vadd.xlane.f32.xlu0 %v385_v32  ;;  %v1235_v35 = vpop.eup %1234  ;;  %v388_v36 = vmul.f32 %v1233_v33, %v1044_v25 }
 0x138   :  { %v389_v44 = vmul.f32 %v1235_v35, %v1044_v25  ;;  %v496_v35 = vsub.s32 2, %v1517_v48 }
 0x139   :  { %398 = vadd.xlane.f32.xlu1 %v387_v34 }
 0x13a   :  { %v1237_v43 = vpop.eup %1236 }
 0x13b   :  { %400 = vadd.xlane.f32.xlu0 %v388_v36  ;;  %v1239_v45 = vpop.eup %1238  ;;  %v390_v47 = vmul.f32 %v1237_v43, %v1044_v25 }
 0x13c   :  { %v391_v49 = vmul.f32 %v1239_v45, %v1044_v25  ;;  %v500_v25 = vsub.s32 3, %v1517_v48 }
 0x13d   :  { %402 = vadd.xlane.f32.xlu1 %v389_v44 }
 0x13f   :  { %404 = vadd.xlane.f32.xlu0 %v390_v47 }
 0x141   :  { %406 = vadd.xlane.f32.xlu1 %v391_v49 }
 0x155   :  { %415 = vperm.xlu0 %1222, %v1045_v50  }
 0x1bc   :  { %v393_v51 = vpop.xlane.xlu0 %392 }
 0x1be   :  { %v397_v53 = vpop.xlane.xlu1 %396 }
 0x1c0   :  { %v395_v54 = vpop.xlane.xlu0 %394 }
 0x1c2   :  { %v399_v55 = vpop.xlane.xlu1 %398 }
 0x1c4   :  { %v401_v56 = vpop.xlane.xlu0 %400 }
 0x1c6   :  { %v403_v59 = vpop.xlane.xlu1 %402 }
 0x1c8   :  { %v405_v60 = vpop.xlane.xlu0 %404 }
 0x1ca   :  { %v407_v0 = vpop.xlane.xlu1 %406 }
 0x1d0   :  { %v416_v63 = vpop.permute.xlu0 %415 }
 0x1d1   :  { %v418_v2 = vadd.f32 %v416_v63, %v393_v51  ;;  %v419_v3 = vadd.f32 %v416_v63, %v395_v54  ;;  %v420_v4 = vadd.f32 %v416_v63, %v397_v53  ;;  %v421_v5 = vadd.f32 %v416_v63, %v399_v55 }
 0x1d2   :  { %v422_v6 = vadd.f32 %v416_v63, %v401_v56  ;;  %v423_v46 = vadd.f32 %v416_v63, %v403_v59  ;;  %v424_v7 = vadd.f32 %v416_v63, %v405_v60  ;;  %v425_v8 = vadd.f32 %v416_v63, %v407_v0 }
 0x1d3   :  { %v439_v9 = vrot.slane %v418_v2, %v1535_v61  ;;  %v444_v10 = vrot.slane %v419_v3, %v1538_v62  ;;  %v450_v11 = vrot.slane %v420_v4, %v1535_v61  ;;  %v454_v12 = vrot.slane %v421_v5, %v1538_v62 }
 0x1d4   :  { %v459_v13 = vrot.slane %v422_v6, %v1535_v61  ;;  %v463_v14 = vrot.slane %v423_v46, %v1538_v62  ;;  %v468_v15 = vrot.slane %v424_v7, %v1535_v61  ;;  %v472_v16 = vrot.slane %v425_v8, %v1538_v62 }
 0x1d5   :  { %v446_v17 = vsel %vm445_vm1, %v444_v10, %v439_v9  ;;  %v455_v18 = vsel %vm445_vm1, %v454_v12, %v450_v11 }
 0x1d6   :  { %v464_v19 = vsel %vm445_vm1, %v463_v14, %v459_v13  ;;  %v475_v20 = vsel %vm474_vm2, %v455_v18, %v446_v17  ;;  %v473_v21 = vsel %vm445_vm1, %v472_v16, %v468_v15 }
 0x1d7   :  { %v477_v22 = vsel %vm476_vm3, %v464_v19, %v475_v20 }
 0x1d8   :  { %v479_v23 = vsel %vm478_vm4, %v473_v21, %v477_v22 }
 0x1d9   :  { %v482_v24 = vsel %vm481_vm5, %v479_v23, -inf }
 0x1da   :  { %483 = vmax.xlane.f32.xlu1 %v482_v24 }
 0x263   :  { %v484_v27 = vpop.xlane.xlu1 %483 }
 0x264   :  { %v489_v28 = vrot.slane %v484_v27, %v1521_v52  ;;  %v501_v29 = vrot.slane %v484_v27, %v500_v25  ;;  %v493_v30 = vrot.slane %v484_v27, %v492_v26  ;;  %v497_v45 = vrot.slane %v484_v27, %v496_v35 }
 0x266   :  { %v506_v31 = vsub.f32 %v418_v2, %v489_v28  ;;  %v507_v32 = vsub.f32 %v419_v3, %v489_v28  ;;  %v513_v34 = vsub.f32 %v425_v8, %v501_v29  ;;  %v508_v36 = vsub.f32 %v420_v4, %v493_v30 }
 0x267   :  { %v509_v47 = vsub.f32 %v421_v5, %v493_v30  ;;  %v510_v50 = vsub.f32 %v422_v6, %v497_v45  ;;  %v511_v53 = vsub.f32 %v423_v46, %v497_v45  ;;  %v512_v56 = vsub.f32 %v424_v7, %v501_v29 }
 0x268   :  { %v514_v33 = vmul.f32 1.442695, %v506_v31  ;;  %v516_v43 = vmul.f32 1.442695, %v507_v32  ;;  %v528_v44 = vmul.f32 1.442695, %v513_v34 }
 0x269   :  { %v518_v49 = vmul.f32 1.442695, %v508_v36  ;;  %v520_v51 = vmul.f32 1.442695, %v509_v47  ;;  %v522_v54 = vmul.f32 1.442695, %v510_v50 }
 0x26a   :  { %1240 = vpow2.f32 %v514_v33  ;;  %v524_v57 = vmul.f32 1.442695, %v511_v53  ;;  %v526_v60 = vmul.f32 1.442695, %v512_v56 }
 0x26b   :  { %1242 = vpow2.f32 %v516_v43 }
 0x26c   :  { %1244 = vpow2.f32 %v528_v44 }
 0x26d   :  { %1246 = vpow2.f32 %v518_v49 }
 0x26e   :  { %1248 = vpow2.f32 %v520_v51 }
 0x26f   :  { %1250 = vpow2.f32 %v522_v54 }
 0x270   :  { %1252 = vpow2.f32 %v524_v57 }
 0x271   :  { %1254 = vpow2.f32 %v526_v60 }
 0x277   :  { %v1241_v55 = vpop.eup %1240 }
 0x278   :  { %539 = vperm.xlu1 %1223, %v1241_v55   ;;  %v1243_v58 = vpop.eup %1242 }
 0x279   :  { %v1566_v59 = vpop.eup %1244 }
 0x27a   :  { %v1247_v63 = vpop.eup %1246  ;;  %560 = vperm.xlu0 %1222, %v1566_v59  }
 0x27b   :  { %v1249_v0 = vpop.eup %1248 }
 0x27c   :  { %542 = vperm.xlu1 %1223, %v1243_v58   ;;  %v1251_v2 = vpop.eup %1250 }
 0x27d   :  { %v1253_v3 = vpop.eup %1252 }
 0x27e   :  { %v1255_v4 = vpop.eup %1254 }
 0x280   :  { %545 = vperm.xlu1 %1223, %v1247_v63  }
 0x284   :  { %548 = vperm.xlu1 %1223, %v1249_v0  }
 0x288   :  { %551 = vperm.xlu1 %1223, %v1251_v2  }
 0x28c   :  { %554 = vperm.xlu1 %1223, %v1253_v3  }
 0x290   :  { %557 = vperm.xlu1 %1223, %v1255_v4  }
 0x2f3   :  { %v540_v5 = vpop.permute.xlu1 %539 }
 0x2f4   :  { %v565_v16 = vrot.slane %v540_v5, %v1535_v61 }
 0x2f5   :  { %v561_v14 = vpop.permute.xlu0 %560 }
 0x2f6   :  { %v596_v20 = vrot.slane %v561_v14, %v1538_v62 }
 0x2f7   :  { %v543_v6 = vpop.permute.xlu1 %542 }
 0x2f8   :  { %v569_v11 = vrot.slane %v543_v6, %v1538_v62 }
 0x2fa   :  { %v570_v21 = vsel %vm445_vm1, %v569_v11, %v565_v16 }
 0x2fb   :  { %v546_v46 = vpop.permute.xlu1 %545 }
 0x2fc   :  { %v574_v12 = vrot.slane %v546_v46, %v1535_v61 }
 0x2ff   :  { %v549_v7 = vpop.permute.xlu1 %548 }
 0x300   :  { %v578_v9 = vrot.slane %v549_v7, %v1538_v62 }
 0x302   :  { %v579_v17 = vsel %vm445_vm1, %v578_v9, %v574_v12 }
 0x303   :  { %v552_v8 = vpop.permute.xlu1 %551  ;;  %v598_v23 = vsel %vm474_vm2, %v579_v17, %v570_v21 }
 0x304   :  { %v583_v15 = vrot.slane %v552_v8, %v1535_v61 }
 0x307   :  { %v555_v10 = vpop.permute.xlu1 %554 }
 0x308   :  { %v587_v13 = vrot.slane %v555_v10, %v1538_v62 }
 0x30a   :  { %v588_v18 = vsel %vm445_vm1, %v587_v13, %v583_v15 }
 0x30b   :  { %v558_v19 = vpop.permute.xlu1 %557  ;;  %v599_v27 = vsel %vm476_vm3, %v588_v18, %v598_v23 }
 0x30c   :  { %v592_v22 = vrot.slane %v558_v19, %v1535_v61 }
 0x30e   :  { %v597_v24 = vsel %vm445_vm1, %v596_v20, %v592_v22 }
 0x30f   :  { %v600_v28 = vsel %vm478_vm4, %v597_v24, %v599_v27 }
 0x310   :  { %v602_v29 = vsel %vm481_vm5, %v600_v28, 0.0 }
 0x311   :  { %603 = vadd.xlane.f32.xlu1 %v602_v29 }
 0x39a   :  { %v604_v30 = vpop.xlane.xlu1 %603 }
 0x39b   :  { %v609_v31 = vrot.slane %v604_v30, %v1521_v52  ;;  %v613_v32 = vrot.slane %v604_v30, %v492_v26  ;;  %v617_v33 = vrot.slane %v604_v30, %v496_v35  ;;  %v621_v43 = vrot.slane %v604_v30, %v500_v25 }
 0x39d   :  { %1256 = vrcp.f32 %v609_v31 }
 0x39e   :  { %1258 = vrcp.f32 %v613_v32 }
 0x39f   :  { %1260 = vrcp.f32 %v617_v33 }
 0x3a0   :  { %1262 = vrcp.f32 %v621_v43 }
 0x3aa   :  { %v1257_v34 = vpop.eup %1256 }
 0x3ab   :  { %v627_v36 = vmul.f32 %v1257_v34, %v1241_v55  ;;  %v628_v44 = vmul.f32 %v1257_v34, %v1243_v58  ;;  %v1259_v45 = vpop.eup %1258 }
 0x3ac   :  { %v630_v52 = vmul.f32 %v1259_v45, %v1247_v63  ;;  %v631_v47 = vmul.f32 %v1259_v45, %v1249_v0  ;;  %v1261_v49 = vpop.eup %1260 }
 0x3ad   :  { %641 = vperm.xlu0 %1222, %v627_v36   ;;  %v633_v26 = vmul.f32 %v1261_v49, %v1251_v2  ;;  %v634_v50 = vmul.f32 %v1261_v49, %v1253_v3  ;;  %v1263_v35 = vpop.eup %1262 }
 0x3ae   :  { %v636_v51 = vmul.f32 %v1263_v35, %v1255_v4  ;;  %v637_v53 = vmul.f32 %v1263_v35, %v1566_v59 }
 0x3b1   :  { %644 = vperm.xlu0 %1222, %v628_v44  }
 0x3b5   :  { %731 = vperm.xlu0 %1222, %v630_v52  }
 0x3b9   :  { %734 = vperm.xlu0 %1222, %v631_v47  }
 0x3bd   :  { %820 = vperm.xlu0 %1222, %v633_v26  }
 0x3c1   :  { %823 = vperm.xlu0 %1222, %v634_v50  }
 0x3c5   :  { %909 = vperm.xlu0 %1222, %v636_v51  }
 0x3c9   :  { %912 = vperm.xlu0 %1222, %v637_v53  }
 0x428   :  { %v642_v48 = vpop.permute.xlu0 %641 }
 0x429   :  { %v649_v54 = vrot.slane %v642_v48, %v1535_v61 }
 0x42c   :  { %v645_v25 = vpop.permute.xlu0 %644 }
 0x42d   :  { %v653_v55 = vrot.slane %v645_v25, %v1538_v62 }
 0x42f   :  { %v654_v56 = vsel %vm445_vm1, %v653_v55, %v649_v54 }
 0x430   :  { %1187 = vmatmul.mubr.msk.f32.vlgmr.msra.gmra.mxu0 %vm655_vm6, %v654_v56  ;;  %v732_v57 = vpop.permute.xlu0 %731 }
 0x431   :  { %1190 = vmatpush3.msra.mxu0 %v1497_v38  ;;  %1193 = vmatprep.mubr.msk.f32.mxu0 %vm1401_vm0, %v1400_v1  ;;  %v739_v59 = vrot.slane %v732_v57, %v1535_v61 }
 0x432   :  { %1191 = vmatprep.subr.mxu0 %v1400_v1 }
 0x433   :  { %1192 = vmatpush3.msra.mxu0 %v1493_v37 }
 0x434   :  { %v735_v58 = vpop.permute.xlu0 %734  ;;  %1196 = vmatprep.subr.mxu0 %v1400_v1 }
 0x435   :  { %v743_v60 = vrot.slane %v735_v58, %v1538_v62 }
 0x437   :  { %v744_v63 = vsel %vm445_vm1, %v743_v60, %v739_v59 }
 0x438   :  { %1194 = vmatmul.mubr.msk.f32.vlgmr.msra.gmra.mxu0 %vm655_vm6, %v744_v63  ;;  %v821_v0 = vpop.permute.xlu0 %820  ;;  %v1007_v6 = vsel %vm474_vm2, %v744_v63, %v654_v56 }
 0x439   :  { %1197 = vmatpush3.msra.mxu0 %v1507_v40  ;;  %1200 = vmatprep.mubr.msk.f32.mxu0 %vm1401_vm0, %v1400_v1  ;;  %v828_v38 = vrot.slane %v821_v0, %v1535_v61 }
 0x43a   :  { %1198 = vmatprep.subr.mxu0 %v1400_v1 }
 0x43b   :  { %1199 = vmatpush3.msra.mxu0 %v1500_v39 }
 0x43c   :  { %v824_v37 = vpop.permute.xlu0 %823  ;;  %1203 = vmatprep.subr.mxu0 %v1400_v1 }
 0x43d   :  { %v832_v2 = vrot.slane %v824_v37, %v1538_v62 }
 0x43f   :  { %v833_v3 = vsel %vm445_vm1, %v832_v2, %v828_v38 }
 0x440   :  { %1201 = vmatmul.mubr.msk.f32.vlgmr.msra.gmra.mxu0 %vm655_vm6, %v833_v3  ;;  %v910_v4 = vpop.permute.xlu0 %909  ;;  %v1008_v7 = vsel %vm476_vm3, %v833_v3, %v1007_v6 }
 0x441   :  { %1204 = vmatpush3.msra.mxu0 %v1513_v42  ;;  %1207 = vmatprep.mubr.msk.f32.mxu0 %vm1401_vm0, %v1400_v1  ;;  %v917_v40 = vrot.slane %v910_v4, %v1535_v61 }
 0x442   :  { %1205 = vmatprep.subr.mxu0 %v1400_v1 }
 0x443   :  { %1206 = vmatpush3.msra.mxu0 %v1509_v41 }
 0x444   :  { %v913_v39 = vpop.permute.xlu0 %912 }
 0x445   :  { %v921_v5 = vrot.slane %v913_v39, %v1538_v62 }
 0x447   :  { %v922_v46 = vsel %vm445_vm1, %v921_v5, %v917_v40 }
 0x448   :  { %1208 = vmatmul.mubr.msk.f32.vlgmr.msra.gmra.mxu0 %vm655_vm6, %v922_v46  ;;  %v1009_v42 = vsel %vm478_vm4, %v922_v46, %v1008_v7 }
 0x449   :  { %1011 = vst.msk [vmem:[#allocation12] sm:$0xf] %vm481_vm5, %v1009_v42 }
 0x44a   :  { %1355 = shalt.err (!%p1352_p10)
}
 0x44b   :  { %1031 = dma.vmem_to_hbm [thread:$0]  %s1029_s27, 64, %s1647_s8, [#allocation13]  }
 0x44c   :  { %s1405_s9 = smov [#allocation11]  }
 0x44d   :  { %s1018_s10 = sshll.u32 %s1405_s9, 4  ;;  %s1019_s10 = int_to_ptr.vmem [resolvable:$true] %s1018_s10 }
 0x44e   :  { %s1364_s8 = scalar_lea.vmem %s1019_s10, 64  ;;  %p1369_p12 = scmp.lt.s32.totalorder %s1019_s10, %s1019_s10 }
 0x44f   :  { %p1365_p11 = scmp.ne.s32.totalorder %s1019_s10, %s1364_s8  ;;  %p1370_p13 = scmp.lt.s32.totalorder %s1364_s8, %s1364_s8 }
 0x451   :  { %p1371_p0 = por %p1370_p13, %p1369_p12 }
 0x453   :  { %p1372_p1 = pnand %p1371_p0, %p1365_p11 }
 0x4f0   :  { %v724_v1 = vpop.f32.mrf.mxu0 }
 0x4f2   :  { %v1188_v41 = vpop.f32.mrf.mxu0 }
 0x4f8   :  { %v813_v61 = vpop.f32.mrf.mxu0 }
 0x4f9   :  { %v999_v10 = vrot.slane %v813_v61, 7 }
 0x4fa   :  { %v1195_v62 = vpop.f32.mrf.mxu0 }
 0x4fb   :  { %v1000_v13 = vsel %vm474_vm2, %v999_v10, %v724_v1 }
 0x500   :  { %v902_v8 = vpop.f32.mrf.mxu0 }
 0x501   :  { %v1001_v11 = vrot.slane %v902_v8, 6 }
 0x502   :  { %v1202_v9 = vpop.f32.mrf.mxu0 }
 0x503   :  { %v1002_v16 = vsel %vm476_vm3, %v1001_v11, %v1000_v13 }
 0x508   :  { %v991_v12 = vpop.f32.mrf.mxu0 }
 0x509   :  { %v1003_v14 = vrot.slane %v991_v12, 5 }
 0x50a   :  { %v1209_v15 = vpop.f32.mrf.mxu0 }
 0x50b   :  { %v1004_v17 = vsel %vm478_vm4, %v1003_v14, %v1002_v16 }
 0x50c   :  { %1006 = vst [vmem:[#allocation11] sm:$0xf] %v1004_v17 }
 0x50d   :  { %1375 = shalt.err (!%p1372_p1)
}
 0x50e   :  { %1021 = dma.vmem_to_hbm [thread:$0]  %s1019_s10, 64, %s1646_s7, [#allocation5]  }
 0x50f   :  { %1390 = dma.done.wait [#allocation5], 64  }
 0x510   :  { %1391 = vsyncadd [#allocation5], 4294967232 }
 0x511   :  { %1392 = dma.done.wait [#allocation13], 64  }
 0x512   :  { %1393 = vsyncadd [#allocation13], 4294967232 }
 0x513   :  { %1038 = vsyncpa [#allocation4], 1 }
 0x514   :  { %1039 = vsyncpa [#allocation7], 1 }
 0x515   :  { %1040 = vsyncpa [#allocation10], 1 }
 0x516   :  { %1041 = vsyncpa [#allocation5], 1 }
 0x517   :  { %1042 = vsyncpa [#allocation13], 1 }

</bundles_post_ra>
